<compile_context>
chip_gen: v5e
topology: v5e:2x2
jax: 0.10.0
libtpu: 0.0.40
codegen_flags: <defaults>
</compile_context>

<pallas_src>
import functools

import jax
import jax.numpy as jnp
from jax.experimental import pallas as pl
from jax.experimental.pallas import tpu as pltpu


def _rnn_kernel(x_ref, wi_ref, wh_ref, b_ref, h0_ref, out_ref, xi_ref, *,
                seq_len, batch, many_to_many):
    """Refs (all VMEM, padded shapes):
         x_ref : (T*Bp, D)   flattened inputs, time-major
         wi_ref: (D, Hp)     Wi^T (zero-padded columns)
         wh_ref: (Hp, Hp)    Wh^T (zero-padded rows & columns)
         b_ref : (1, Hp)     fh bias (zero-padded)
         h0_ref: (Bp, Hp)    initial hidden state
         out_ref: (T*Bp, Hp) if many_to_many else (Bp, Hp)
         xi_ref: (T*Bp, Hp)  scratch for the hoisted input projection
    """
    # Prologue: hoisted input projection + bias for ALL timesteps (one big matmul,
    # off the serial critical path).
    xi_ref[...] = (jnp.dot(x_ref[...], wi_ref[...],
                           preferred_element_type=jnp.float32) + b_ref[...])

    wh = wh_ref[...]                 # (Hp, Hp) resident for the whole recurrence

    def step(t, h):
        row = pl.multiple_of(t * batch, 8)        # sublane-aligned row offset
        xi = xi_ref[pl.ds(row, batch), :]         # (Bp, Hp), lane-dense load
        h_new = jax.nn.sigmoid(
            xi + jnp.dot(h, wh, preferred_element_type=jnp.float32))
        if many_to_many:                          # static Python flag
            out_ref[pl.ds(row, batch), :] = h_new  # lane-dense store
        return h_new

    # Serial recurrence.  T is tiny here -> full unroll; for long sequences use a
    # partial unroll factor (e.g. unroll=8) instead.
    h_last = jax.lax.fori_loop(0, seq_len, step,
                               h0_ref[...].astype(jnp.float32), unroll=True)

    if not many_to_many:
        out_ref[...] = h_last                     # only the final hidden state


def rnn_forward(X, h0, Wi, Wh, bh, many_to_many=False):
    """X:(T,B,D) f32; h0:(B,H) f32; Wi:(H,D)=fi.weight; Wh:(H,H)=fh.weight; bh:(H,)=fh.bias."""
    T, B, D = X.shape
    H = h0.shape[1]

    # TPU-friendly padding: lanes (last dim) -> multiple of 128, sublanes -> multiple of 8.
    Hp = pl.cdiv(H, 128) * 128
    Bp = pl.cdiv(B, 8) * 8

    x_p = jnp.pad(X, ((0, 0), (0, Bp - B), (0, 0))).reshape(T * Bp, D)
    h0_p = jnp.pad(h0, ((0, Bp - B), (0, Hp - H)))
    wi_p = jnp.pad(Wi.T, ((0, 0), (0, Hp - H)))                # (D, Hp)
    wh_p = jnp.pad(Wh.T, ((0, Hp - H), (0, Hp - H)))           # (Hp, Hp)
    b_p = jnp.pad(bh.reshape(1, H), ((0, 0), (0, Hp - H)))     # (1, Hp)
    # TODO(synk): for realistic hidden sizes on v6e/v7x, cast wi_p/wh_p/x_p to
    # bfloat16 (keep f32 accumulation + f32 sigmoid) and, on v7x, tile the
    # h @ Wh^T matmul over Hp chunks + set vmem_limit_bytes to fit 64 MiB VMEM.

    out_shape = (jax.ShapeDtypeStruct((T * Bp, Hp), jnp.float32) if many_to_many
                 else jax.ShapeDtypeStruct((Bp, Hp), jnp.float32))

    kernel = functools.partial(_rnn_kernel, seq_len=T, batch=Bp,
                               many_to_many=many_to_many)

    vmem = pl.BlockSpec(memory_space=pltpu.MemorySpace.VMEM)
    out = pl.pallas_call(
        kernel,
        out_shape=out_shape,
        in_specs=[vmem, vmem, vmem, vmem, vmem],
        out_specs=vmem,
        scratch_shapes=[pltpu.VMEM((T * Bp, Hp), jnp.float32)],  # hoisted X @ Wi^T + b
    )(x_p, wi_p, wh_p, b_p, h0_p)

    if many_to_many:
        return out.reshape(T, Bp, Hp)[:, :B, :H]   # == torch.stack(hiddens[1:], 0)
    return out[:B, :H]                              # == hiddens[-1]


def rnn_reference(X, h0, Wi, Wh, bh, many_to_many=False):
    def step(h, x):
        h_new = jax.nn.sigmoid(x @ Wi.T + h @ Wh.T + bh)
        return h_new, h_new
    h_last, hs = jax.lax.scan(step, h0, X)
    return hs if many_to_many else h_last


if __name__ == "__main__":
    T, B, D, H = 8, 8, 16, 32     # seq=8, batch=8, inDim=16, hiddenDim=32

    key = jax.random.PRNGKey(0)
    kx, kh, kwi, kwh, kb = jax.random.split(key, 5)
    X = jax.random.normal(kx, (T, B, D), dtype=jnp.float32)
    h0 = jax.random.normal(kh, (B, H), dtype=jnp.float32)
    # nn.Linear weight layout: (out, in).  fi has bias=False, fh has bias.
    Wi = jax.random.normal(kwi, (H, D), dtype=jnp.float32) * 0.1
    Wh = jax.random.normal(kwh, (H, H), dtype=jnp.float32) * 0.1
    bh = jax.random.normal(kb, (H,), dtype=jnp.float32) * 0.1

    out_last = rnn_forward(X, h0, Wi, Wh, bh, many_to_many=False)
    out_all = rnn_forward(X, h0, Wi, Wh, bh, many_to_many=True)
    jax.block_until_ready(out_last)
    jax.block_until_ready(out_all)

    ref_last = rnn_reference(X, h0, Wi, Wh, bh, many_to_many=False)
    ref_all = rnn_reference(X, h0, Wi, Wh, bh, many_to_many=True)
    assert jnp.allclose(out_last, ref_last, atol=1e-5, rtol=1e-5)
    assert jnp.allclose(out_all, ref_all, atol=1e-5, rtol=1e-5)

    print("KERNEL_OK")
</pallas_src>

<mosaic_0001>
module attributes {stable_mosaic.version = 11 : i64} {
  func.func @_rnn_kernel(%arg0: memref<64x16xf32, #tpu.memory_space<vmem>>, %arg1: memref<16x128xf32, #tpu.memory_space<vmem>>, %arg2: memref<128x128xf32, #tpu.memory_space<vmem>>, %arg3: memref<1x128xf32, #tpu.memory_space<vmem>>, %arg4: memref<8x128xf32, #tpu.memory_space<vmem>>, %arg5: memref<8x128xf32, #tpu.memory_space<vmem>>, %arg6: memref<64x128xf32, #tpu.memory_space<vmem>>) attributes {dimension_semantics = [], scalar_prefetch = 0 : i64, scratch_operands = 1 : i64, tpu.core_type = #tpu.core_type<tc>} {
    %c0 = arith.constant 0 : index
    %c0_0 = arith.constant 0 : index
    %0 = vector.load %arg0[%c0, %c0_0] : memref<64x16xf32, #tpu.memory_space<vmem>>, vector<64x16xf32>
    %c0_1 = arith.constant 0 : index
    %c0_2 = arith.constant 0 : index
    %1 = vector.load %arg1[%c0_1, %c0_2] : memref<16x128xf32, #tpu.memory_space<vmem>>, vector<16x128xf32>
    %cst = arith.constant dense<0.000000e+00> : vector<64x128xf32>
    %2 = tpu.matmul %0, %1, %cst {dimension_numbers = #tpu.dot_dimension_numbers<[1], [0], [0], [1], [0, 0, 1, 1], [], []>} : vector<64x16xf32>, vector<16x128xf32>, vector<64x128xf32> -> vector<64x128xf32>
    %c0_3 = arith.constant 0 : index
    %c0_4 = arith.constant 0 : index
    %3 = vector.load %arg3[%c0_3, %c0_4] : memref<1x128xf32, #tpu.memory_space<vmem>>, vector<1x128xf32>
    %4 = vector.broadcast %3 : vector<1x128xf32> to vector<64x128xf32>
    %5 = arith.addf %2, %4 : vector<64x128xf32>
    %c0_5 = arith.constant 0 : index
    %c0_6 = arith.constant 0 : index
    %6 = vector.load %arg6[%c0_5, %c0_6] : memref<64x128xf32, #tpu.memory_space<vmem>>, vector<64x128xf32>
    tpu.vector_store %arg6[%c0_5, %c0_6], %5 {strides = array<i32>} : memref<64x128xf32, #tpu.memory_space<vmem>>, vector<64x128xf32>,
    %c0_7 = arith.constant 0 : index
    %c0_8 = arith.constant 0 : index
    %7 = vector.load %arg2[%c0_7, %c0_8] : memref<128x128xf32, #tpu.memory_space<vmem>>, vector<128x128xf32>
    %c0_9 = arith.constant 0 : index
    %c0_10 = arith.constant 0 : index
    %8 = vector.load %arg4[%c0_9, %c0_10] : memref<8x128xf32, #tpu.memory_space<vmem>>, vector<8x128xf32>
    %c0_i32 = arith.constant 0 : i32
    %c8_i32 = arith.constant 8 : i32
    %9 = arith.muli %c0_i32, %c8_i32 : i32
    %10 = tpu.assume_multiple %9, 8 : i32
    %11 = arith.index_cast %10 : i32 to index
    %c0_11 = arith.constant 0 : index
    %12 = vector.load %arg6[%11, %c0_11] : memref<64x128xf32, #tpu.memory_space<vmem>>, vector<8x128xf32>
    %cst_12 = arith.constant dense<0.000000e+00> : vector<8x128xf32>
    %13 = tpu.matmul %8, %7, %cst_12 {dimension_numbers = #tpu.dot_dimension_numbers<[1], [0], [0], [1], [0, 0, 1, 1], [], []>} : vector<8x128xf32>, vector<128x128xf32>, vector<8x128xf32> -> vector<8x128xf32>
    %14 = arith.addf %12, %13 : vector<8x128xf32>
    %15 = arith.negf %14 : vector<8x128xf32>
    %16 = math.exp %15 : vector<8x128xf32>
    %cst_13 = arith.constant 1.000000e+00 : f32
    %17 = vector.broadcast %cst_13 : f32 to vector<8x128xf32>
    %18 = arith.addf %17, %16 : vector<8x128xf32>
    %19 = arith.divf %17, %18 : vector<8x128xf32>
    %c1_i32 = arith.constant 1 : i32
    %c8_i32_14 = arith.constant 8 : i32
    %20 = arith.muli %c1_i32, %c8_i32_14 : i32
    %21 = tpu.assume_multiple %20, 8 : i32
    %22 = arith.index_cast %21 : i32 to index
    %c0_15 = arith.constant 0 : index
    %23 = vector.load %arg6[%22, %c0_15] : memref<64x128xf32, #tpu.memory_space<vmem>>, vector<8x128xf32>
    %cst_16 = arith.constant dense<0.000000e+00> : vector<8x128xf32>
    %24 = tpu.matmul %19, %7, %cst_16 {dimension_numbers = #tpu.dot_dimension_numbers<[1], [0], [0], [1], [0, 0, 1, 1], [], []>} : vector<8x128xf32>, vector<128x128xf32>, vector<8x128xf32> -> vector<8x128xf32>
    %25 = arith.addf %23, %24 : vector<8x128xf32>
    %26 = arith.negf %25 : vector<8x128xf32>
    %27 = math.exp %26 : vector<8x128xf32>
    %cst_17 = arith.constant 1.000000e+00 : f32
    %28 = vector.broadcast %cst_17 : f32 to vector<8x128xf32>
    %29 = arith.addf %28, %27 : vector<8x128xf32>
    %30 = arith.divf %28, %29 : vector<8x128xf32>
    %c2_i32 = arith.constant 2 : i32
    %c8_i32_18 = arith.constant 8 : i32
    %31 = arith.muli %c2_i32, %c8_i32_18 : i32
    %32 = tpu.assume_multiple %31, 8 : i32
    %33 = arith.index_cast %32 : i32 to index
    %c0_19 = arith.constant 0 : index
    %34 = vector.load %arg6[%33, %c0_19] : memref<64x128xf32, #tpu.memory_space<vmem>>, vector<8x128xf32>
    %cst_20 = arith.constant dense<0.000000e+00> : vector<8x128xf32>
    %35 = tpu.matmul %30, %7, %cst_20 {dimension_numbers = #tpu.dot_dimension_numbers<[1], [0], [0], [1], [0, 0, 1, 1], [], []>} : vector<8x128xf32>, vector<128x128xf32>, vector<8x128xf32> -> vector<8x128xf32>
    %36 = arith.addf %34, %35 : vector<8x128xf32>
    %37 = arith.negf %36 : vector<8x128xf32>
    %38 = math.exp %37 : vector<8x128xf32>
    %cst_21 = arith.constant 1.000000e+00 : f32
    %39 = vector.broadcast %cst_21 : f32 to vector<8x128xf32>
    %40 = arith.addf %39, %38 : vector<8x128xf32>
    %41 = arith.divf %39, %40 : vector<8x128xf32>
    %c3_i32 = arith.constant 3 : i32
    %c8_i32_22 = arith.constant 8 : i32
    %42 = arith.muli %c3_i32, %c8_i32_22 : i32
    %43 = tpu.assume_multiple %42, 8 : i32
    %44 = arith.index_cast %43 : i32 to index
    %c0_23 = arith.constant 0 : index
    %45 = vector.load %arg6[%44, %c0_23] : memref<64x128xf32, #tpu.memory_space<vmem>>, vector<8x128xf32>
    %cst_24 = arith.constant dense<0.000000e+00> : vector<8x128xf32>
    %46 = tpu.matmul %41, %7, %cst_24 {dimension_numbers = #tpu.dot_dimension_numbers<[1], [0], [0], [1], [0, 0, 1, 1], [], []>} : vector<8x128xf32>, vector<128x128xf32>, vector<8x128xf32> -> vector<8x128xf32>
    %47 = arith.addf %45, %46 : vector<8x128xf32>
    %48 = arith.negf %47 : vector<8x128xf32>
    %49 = math.exp %48 : vector<8x128xf32>
    %cst_25 = arith.constant 1.000000e+00 : f32
    %50 = vector.broadcast %cst_25 : f32 to vector<8x128xf32>
    %51 = arith.addf %50, %49 : vector<8x128xf32>
    %52 = arith.divf %50, %51 : vector<8x128xf32>
    %c4_i32 = arith.constant 4 : i32
    %c8_i32_26 = arith.constant 8 : i32
    %53 = arith.muli %c4_i32, %c8_i32_26 : i32
    %54 = tpu.assume_multiple %53, 8 : i32
    %55 = arith.index_cast %54 : i32 to index
    %c0_27 = arith.constant 0 : index
    %56 = vector.load %arg6[%55, %c0_27] : memref<64x128xf32, #tpu.memory_space<vmem>>, vector<8x128xf32>
    %cst_28 = arith.constant dense<0.000000e+00> : vector<8x128xf32>
    %57 = tpu.matmul %52, %7, %cst_28 {dimension_numbers = #tpu.dot_dimension_numbers<[1], [0], [0], [1], [0, 0, 1, 1], [], []>} : vector<8x128xf32>, vector<128x128xf32>, vector<8x128xf32> -> vector<8x128xf32>
    %58 = arith.addf %56, %57 : vector<8x128xf32>
    %59 = arith.negf %58 : vector<8x128xf32>
    %60 = math.exp %59 : vector<8x128xf32>
    %cst_29 = arith.constant 1.000000e+00 : f32
    %61 = vector.broadcast %cst_29 : f32 to vector<8x128xf32>
    %62 = arith.addf %61, %60 : vector<8x128xf32>
    %63 = arith.divf %61, %62 : vector<8x128xf32>
    %c5_i32 = arith.constant 5 : i32
    %c8_i32_30 = arith.constant 8 : i32
    %64 = arith.muli %c5_i32, %c8_i32_30 : i32
    %65 = tpu.assume_multiple %64, 8 : i32
    %66 = arith.index_cast %65 : i32 to index
    %c0_31 = arith.constant 0 : index
    %67 = vector.load %arg6[%66, %c0_31] : memref<64x128xf32, #tpu.memory_space<vmem>>, vector<8x128xf32>
    %cst_32 = arith.constant dense<0.000000e+00> : vector<8x128xf32>
    %68 = tpu.matmul %63, %7, %cst_32 {dimension_numbers = #tpu.dot_dimension_numbers<[1], [0], [0], [1], [0, 0, 1, 1], [], []>} : vector<8x128xf32>, vector<128x128xf32>, vector<8x128xf32> -> vector<8x128xf32>
    %69 = arith.addf %67, %68 : vector<8x128xf32>
    %70 = arith.negf %69 : vector<8x128xf32>
    %71 = math.exp %70 : vector<8x128xf32>
    %cst_33 = arith.constant 1.000000e+00 : f32
    %72 = vector.broadcast %cst_33 : f32 to vector<8x128xf32>
    %73 = arith.addf %72, %71 : vector<8x128xf32>
    %74 = arith.divf %72, %73 : vector<8x128xf32>
    %c6_i32 = arith.constant 6 : i32
    %c8_i32_34 = arith.constant 8 : i32
    %75 = arith.muli %c6_i32, %c8_i32_34 : i32
    %76 = tpu.assume_multiple %75, 8 : i32
    %77 = arith.index_cast %76 : i32 to index
    %c0_35 = arith.constant 0 : index
    %78 = vector.load %arg6[%77, %c0_35] : memref<64x128xf32, #tpu.memory_space<vmem>>, vector<8x128xf32>
    %cst_36 = arith.constant dense<0.000000e+00> : vector<8x128xf32>
    %79 = tpu.matmul %74, %7, %cst_36 {dimension_numbers = #tpu.dot_dimension_numbers<[1], [0], [0], [1], [0, 0, 1, 1], [], []>} : vector<8x128xf32>, vector<128x128xf32>, vector<8x128xf32> -> vector<8x128xf32>
    %80 = arith.addf %78, %79 : vector<8x128xf32>
    %81 = arith.negf %80 : vector<8x128xf32>
    %82 = math.exp %81 : vector<8x128xf32>
    %cst_37 = arith.constant 1.000000e+00 : f32
    %83 = vector.broadcast %cst_37 : f32 to vector<8x128xf32>
    %84 = arith.addf %83, %82 : vector<8x128xf32>
    %85 = arith.divf %83, %84 : vector<8x128xf32>
    %c7_i32 = arith.constant 7 : i32
    %c8_i32_38 = arith.constant 8 : i32
    %86 = arith.muli %c7_i32, %c8_i32_38 : i32
    %87 = tpu.assume_multiple %86, 8 : i32
    %88 = arith.index_cast %87 : i32 to index
    %c0_39 = arith.constant 0 : index
    %89 = vector.load %arg6[%88, %c0_39] : memref<64x128xf32, #tpu.memory_space<vmem>>, vector<8x128xf32>
    %cst_40 = arith.constant dense<0.000000e+00> : vector<8x128xf32>
    %90 = tpu.matmul %85, %7, %cst_40 {dimension_numbers = #tpu.dot_dimension_numbers<[1], [0], [0], [1], [0, 0, 1, 1], [], []>} : vector<8x128xf32>, vector<128x128xf32>, vector<8x128xf32> -> vector<8x128xf32>
    %91 = arith.addf %89, %90 : vector<8x128xf32>
    %92 = arith.negf %91 : vector<8x128xf32>
    %93 = math.exp %92 : vector<8x128xf32>
    %cst_41 = arith.constant 1.000000e+00 : f32
    %94 = vector.broadcast %cst_41 : f32 to vector<8x128xf32>
    %95 = arith.addf %94, %93 : vector<8x128xf32>
    %96 = arith.divf %94, %95 : vector<8x128xf32>
    %c8_i32_42 = arith.constant 8 : i32
    %c0_43 = arith.constant 0 : index
    %c0_44 = arith.constant 0 : index
    %97 = vector.load %arg5[%c0_43, %c0_44] : memref<8x128xf32, #tpu.memory_space<vmem>>, vector<8x128xf32>
    tpu.vector_store %arg5[%c0_43, %c0_44], %96 {strides = array<i32>} : memref<8x128xf32, #tpu.memory_space<vmem>>, vector<8x128xf32>,
    return
  }
}

</mosaic_0001>

<bundles_post_ra>
// kernel: tpu_custom_call.1
= control target key start
LH: loop header
LB: loop body
LE: loop exit
PB: predicated region body
PF: predicated region fallthrough
CT: control target
= control target key end

     0   :  { %10 = vsyncpa [#allocation4], 0  ;;  %s854_s0 = inlined_call_operand.vmem [shape: f32[64,16], index: 0, kind: input, shape index: {}]   ;;  %s855_s1 = inlined_call_operand.vmem [shape: f32[16,128], index: 1, kind: input, shape index: {}]   ;;  %s856_s2 = inlined_call_operand.hbm [shape: f32[128,128], index: 2, kind: input, shape index: {}]   ;;  %s857_s3 = inlined_call_operand.vmem [shape: f32[1,128], index: 3, kind: input, shape index: {}]   ;;  %s858_s4 = inlined_call_operand.vmem [shape: f32[8,128], index: 4, kind: input, shape index: {}]   ;;  %s859_s5 = inlined_call_operand.hbm [shape: f32[8,128], index: 5, kind: output, shape index: {}]  }
   0x1   :  { %11 = vsyncpa [#allocation5], 0  ;;  %s20_s20 = sshll.u32 %s856_s2, 4  ;;  %s600_s21 = smov [#allocation3]   ;;  %s21_s20 = int_to_ptr.hbm [resolvable:$true] %s20_s20 }
   0x2   :  { %s22_s22 = sshll.u32 %s600_s21, 4  ;;  %s601_s23 = smov 128   ;;  %s23_s22 = int_to_ptr.vmem [resolvable:$true] %s22_s22 }
   0x3   :  { %s602_s24 = smov 8  }
   0x4   :  { %28 = dma.hbm_to_vmem [thread:$0]  %s21_s20, 2048, %s23_s22, [#allocation4], %s601_s23, %s601_s23, %s602_s24  }
   0x5   :  { %596 = dma.done.wait [#allocation4], 2048  }
   0x6   :  { %597 = vsyncadd [#allocation4], 4294965248  ;;  %v637_v0 = vld [vmem:[#allocation3 + $0x78] sm:$0xff]  ;;  %v639_v1 = vld [vmem:[#allocation3 + $0x70] sm:$0xff]  ;;  %vm51_vm0 = vcmask 130048   ;;  %s485_s23 = sshll.u32 %s859_s5, 4  ;;  %s486_s23 = int_to_ptr.hbm [resolvable:$true] %s485_s23 }
   0x7   :  { %143 = vmatpush.msra.mxu1 %v637_v0  ;;  %185 = vmatpush.msra.mxu2 %v637_v0  ;;  %v643_v2 = vld [vmem:[#allocation3 + $0x68] sm:$0xff]  ;;  %v648_v3 = vld [vmem:[#allocation3 + $0x60] sm:$0xff]  ;;  %v661_v7 = vld [vmem:[#allocation3 + $0x58] sm:$0xff] }
   0x8   :  { %227 = vmatpush.msra.mxu3 %v637_v0  ;;  %v46_v4 = vld [vmem:[%s855_s1 + $0x8] sm:$0xff]  ;;  %v45_v5 = vld [vmem:[%s855_s1] sm:$0xff]  ;;  %v666_v8 = vld [vmem:[#allocation3 + $0x50] sm:$0xff] }
   0x9   :  { %144 = vmatpush.msra.mxu1 %v639_v1  ;;  %186 = vmatpush.msra.mxu2 %v639_v1  ;;  %v37_v6 = vld [vmem:[%s854_s0] sm:$0xff]  ;;  %v672_v9 = vld [vmem:[#allocation3 + $0x48] sm:$0xff]  ;;  %v684_v11 = vld [vmem:[#allocation3 + $0x38] sm:$0xff] }
   0xa   :  { %228 = vmatpush.msra.mxu3 %v639_v1  ;;  %90 = vmatpush.msra.mxu0 %v46_v4  ;;  %v678_v10 = vld [vmem:[#allocation3 + $0x40] sm:$0xff]  ;;  %v690_v12 = vld [vmem:[#allocation3 + $0x30] sm:$0xff]  ;;  %v696_v13 = vld [vmem:[#allocation3 + $0x28] sm:$0xff] }
   0xb   :  { %145 = vmatpush.msra.mxu1 %v643_v2  ;;  %187 = vmatpush.msra.mxu2 %v643_v2  ;;  %v702_v14 = vld [vmem:[#allocation3 + $0x20] sm:$0xff]  ;;  %v708_v15 = vld [vmem:[#allocation3 + $0x18] sm:$0xff]  ;;  %v714_v16 = vld [vmem:[#allocation3 + $0x10] sm:$0xff] }
   0xc   :  { %229 = vmatpush.msra.mxu3 %v643_v2  ;;  %91 = vmatpush.msra.mxu0 %v45_v5  ;;  %v720_v17 = vld [vmem:[#allocation3 + $0x8] sm:$0xff]  ;;  %v726_v18 = vld [vmem:[#allocation3] sm:$0xff]  ;;  %v39_v41 = vld [vmem:[%s854_s0 + $0x10] sm:$0xff] }
   0xd   :  { %146 = vmatpush.msra.mxu1 %v648_v3  ;;  %495 = vmatmul.msk.f32.vlgmr.msra.gmra.mxu0 %vm51_vm0, %v37_v6  ;;  %v141_v19 = vld [vmem:[%s858_s4] sm:$0xff]  ;;  %v38_v23 = vld [vmem:[%s854_s0 + $0x8] sm:$0xff]  ;;  %v40_v57 = vld [vmem:[%s854_s0 + $0x18] sm:$0xff] }
   0xe   :  { %188 = vmatpush.msra.mxu2 %v648_v3  ;;  %230 = vmatpush.msra.mxu3 %v648_v3  ;;  %v813_v20 = vld [vmem:[%s857_s3] ss:$0 sm:$0xff] }
   0xf   :  { %147 = vmatpush.msra.mxu1 %v661_v7  ;;  %395 = vmatpush.msrb.mxu0 %v637_v0 }
  0x10   :  { %189 = vmatpush.msra.mxu2 %v661_v7  ;;  %231 = vmatpush.msra.mxu3 %v661_v7 }
  0x11   :  { %148 = vmatpush.msra.mxu1 %v666_v8  ;;  %396 = vmatpush.msrb.mxu0 %v639_v1 }
  0x12   :  { %190 = vmatpush.msra.mxu2 %v666_v8  ;;  %232 = vmatpush.msra.mxu3 %v666_v8 }
  0x13   :  { %149 = vmatpush.msra.mxu1 %v672_v9  ;;  %397 = vmatpush.msrb.mxu0 %v643_v2 }
  0x14   :  { %191 = vmatpush.msra.mxu2 %v672_v9  ;;  %233 = vmatpush.msra.mxu3 %v672_v9 }
  0x15   :  { %150 = vmatpush.msra.mxu1 %v678_v10  ;;  %398 = vmatpush.msrb.mxu0 %v648_v3 }
  0x16   :  { %192 = vmatpush.msra.mxu2 %v678_v10  ;;  %234 = vmatpush.msra.mxu3 %v678_v10 }
  0x17   :  { %151 = vmatpush.msra.mxu1 %v684_v11  ;;  %399 = vmatpush.msrb.mxu0 %v661_v7 }
  0x18   :  { %193 = vmatpush.msra.mxu2 %v684_v11  ;;  %235 = vmatpush.msra.mxu3 %v684_v11 }
  0x19   :  { %152 = vmatpush.msra.mxu1 %v690_v12  ;;  %400 = vmatpush.msrb.mxu0 %v666_v8 }
  0x1a   :  { %194 = vmatpush.msra.mxu2 %v690_v12  ;;  %236 = vmatpush.msra.mxu3 %v690_v12 }
  0x1b   :  { %153 = vmatpush.msra.mxu1 %v696_v13  ;;  %401 = vmatpush.msrb.mxu0 %v672_v9 }
  0x1c   :  { %195 = vmatpush.msra.mxu2 %v696_v13  ;;  %237 = vmatpush.msra.mxu3 %v696_v13 }
  0x1d   :  { %154 = vmatpush.msra.mxu1 %v702_v14  ;;  %402 = vmatpush.msrb.mxu0 %v678_v10 }
  0x1e   :  { %196 = vmatpush.msra.mxu2 %v702_v14  ;;  %238 = vmatpush.msra.mxu3 %v702_v14 }
  0x1f   :  { %155 = vmatpush.msra.mxu1 %v708_v15  ;;  %403 = vmatpush.msrb.mxu0 %v684_v11 }
  0x20   :  { %197 = vmatpush.msra.mxu2 %v708_v15  ;;  %239 = vmatpush.msra.mxu3 %v708_v15 }
  0x21   :  { %156 = vmatpush.msra.mxu1 %v714_v16  ;;  %404 = vmatpush.msrb.mxu0 %v690_v12 }
  0x22   :  { %198 = vmatpush.msra.mxu2 %v714_v16  ;;  %240 = vmatpush.msra.mxu3 %v714_v16 }
  0x23   :  { %157 = vmatpush.msra.mxu1 %v720_v17  ;;  %405 = vmatpush.msrb.mxu0 %v696_v13 }
  0x24   :  { %199 = vmatpush.msra.mxu2 %v720_v17  ;;  %241 = vmatpush.msra.mxu3 %v720_v17 }
  0x25   :  { %158 = vmatpush.msra.mxu1 %v726_v18  ;;  %406 = vmatpush.msrb.mxu0 %v702_v14 }
  0x26   :  { %159 = vmatmul.f32.vlgmr.msra.gmra.mxu1 %v141_v19  ;;  %200 = vmatpush.msra.mxu2 %v726_v18 }
  0x27   :  { %242 = vmatpush.msra.mxu3 %v726_v18  ;;  %269 = vmatpush.msrb.mxu1 %v637_v0 }
  0x28   :  { %311 = vmatpush.msrb.mxu2 %v637_v0  ;;  %407 = vmatpush.msrb.mxu0 %v708_v15 }
  0x29   :  { %353 = vmatpush.msrb.mxu3 %v637_v0  ;;  %270 = vmatpush.msrb.mxu1 %v639_v1 }
  0x2a   :  { %312 = vmatpush.msrb.mxu2 %v639_v1  ;;  %408 = vmatpush.msrb.mxu0 %v714_v16 }
  0x2b   :  { %354 = vmatpush.msrb.mxu3 %v639_v1  ;;  %271 = vmatpush.msrb.mxu1 %v643_v2 }
  0x2c   :  { %313 = vmatpush.msrb.mxu2 %v643_v2  ;;  %409 = vmatpush.msrb.mxu0 %v720_v17 }
  0x2d   :  { %355 = vmatpush.msrb.mxu3 %v643_v2  ;;  %272 = vmatpush.msrb.mxu1 %v648_v3 }
  0x2e   :  { %314 = vmatpush.msrb.mxu2 %v648_v3  ;;  %410 = vmatpush.msrb.mxu0 %v726_v18 }
  0x2f   :  { %356 = vmatpush.msrb.mxu3 %v648_v3  ;;  %273 = vmatpush.msrb.mxu1 %v661_v7 }
  0x30   :  { %315 = vmatpush.msrb.mxu2 %v661_v7  ;;  %496 = vmatmul.msk.f32.gmra.mxu0 %vm51_vm0, %v38_v23 }
  0x31   :  { %357 = vmatpush.msrb.mxu3 %v661_v7  ;;  %274 = vmatpush.msrb.mxu1 %v666_v8 }
  0x32   :  { %316 = vmatpush.msrb.mxu2 %v666_v8 }
  0x33   :  { %358 = vmatpush.msrb.mxu3 %v666_v8  ;;  %275 = vmatpush.msrb.mxu1 %v672_v9 }
  0x34   :  { %317 = vmatpush.msrb.mxu2 %v672_v9 }
  0x35   :  { %359 = vmatpush.msrb.mxu3 %v672_v9  ;;  %276 = vmatpush.msrb.mxu1 %v678_v10 }
  0x36   :  { %318 = vmatpush.msrb.mxu2 %v678_v10 }
  0x37   :  { %360 = vmatpush.msrb.mxu3 %v678_v10  ;;  %277 = vmatpush.msrb.mxu1 %v684_v11 }
  0x38   :  { %319 = vmatpush.msrb.mxu2 %v684_v11  ;;  %497 = vmatmul.msk.f32.gmra.mxu0 %vm51_vm0, %v39_v41 }
  0x39   :  { %361 = vmatpush.msrb.mxu3 %v684_v11  ;;  %278 = vmatpush.msrb.mxu1 %v690_v12 }
  0x3a   :  { %320 = vmatpush.msrb.mxu2 %v690_v12 }
  0x3b   :  { %362 = vmatpush.msrb.mxu3 %v690_v12  ;;  %279 = vmatpush.msrb.mxu1 %v696_v13 }
  0x3c   :  { %321 = vmatpush.msrb.mxu2 %v696_v13 }
  0x3d   :  { %363 = vmatpush.msrb.mxu3 %v696_v13  ;;  %280 = vmatpush.msrb.mxu1 %v702_v14 }
  0x3e   :  { %322 = vmatpush.msrb.mxu2 %v702_v14 }
  0x3f   :  { %364 = vmatpush.msrb.mxu3 %v702_v14  ;;  %281 = vmatpush.msrb.mxu1 %v708_v15 }
  0x40   :  { %323 = vmatpush.msrb.mxu2 %v708_v15  ;;  %498 = vmatmul.msk.f32.gmra.mxu0 %vm51_vm0, %v40_v57 }
  0x41   :  { %365 = vmatpush.msrb.mxu3 %v708_v15  ;;  %282 = vmatpush.msrb.mxu1 %v714_v16 }
  0x42   :  { %324 = vmatpush.msrb.mxu2 %v714_v16 }
  0x43   :  { %366 = vmatpush.msrb.mxu3 %v714_v16  ;;  %283 = vmatpush.msrb.mxu1 %v720_v17 }
  0x44   :  { %325 = vmatpush.msrb.mxu2 %v720_v17 }
  0x45   :  { %367 = vmatpush.msrb.mxu3 %v720_v17  ;;  %284 = vmatpush.msrb.mxu1 %v726_v18 }
  0x46   :  { %326 = vmatpush.msrb.mxu2 %v726_v18 }
  0x47   :  { %368 = vmatpush.msrb.mxu3 %v726_v18  ;;  %437 = vmatpush.msra.mxu1 %v637_v0 }
  0x49   :  { %438 = vmatpush.msra.mxu1 %v639_v1 }
  0x4b   :  { %439 = vmatpush.msra.mxu1 %v643_v2 }
  0x4d   :  { %440 = vmatpush.msra.mxu1 %v648_v3 }
  0x4f   :  { %441 = vmatpush.msra.mxu1 %v661_v7 }
  0x51   :  { %442 = vmatpush.msra.mxu1 %v666_v8 }
  0x53   :  { %443 = vmatpush.msra.mxu1 %v672_v9 }
  0x55   :  { %444 = vmatpush.msra.mxu1 %v678_v10 }
  0x57   :  { %445 = vmatpush.msra.mxu1 %v684_v11 }
  0x59   :  { %446 = vmatpush.msra.mxu1 %v690_v12 }
  0x5b   :  { %447 = vmatpush.msra.mxu1 %v696_v13  ;;  %v41_v13 = vld [vmem:[%s854_s0 + $0x20] sm:$0xff] }
  0x5c   :  { %499 = vmatmul.msk.f32.gmra.mxu0 %vm51_vm0, %v41_v13 }
  0x5d   :  { %448 = vmatpush.msra.mxu1 %v702_v14 }
  0x5f   :  { %449 = vmatpush.msra.mxu1 %v708_v15 }
  0x61   :  { %450 = vmatpush.msra.mxu1 %v714_v16 }
  0x63   :  { %451 = vmatpush.msra.mxu1 %v720_v17 }
  0x65   :  { %452 = vmatpush.msra.mxu1 %v726_v18 }
  0x8a   :  { %v93_v21 = vpop.f32.mrf.mxu0 }
  0x8b   :  { %v94_v22 = vadd.f32 %v813_v20, %v93_v21 }
  0xa3   :  { %v160_v24 = vpop.f32.mrf.mxu1 }
  0xa4   :  { %v163_v25 = vadd.f32 %v160_v24, %v94_v22 }
  0xa6   :  { %v503_v26 = vmul.f32 -1.442695, %v163_v25 }
  0xa8   :  { %516 = vpow2.f32 %v503_v26 }
  0xad   :  { %v96_v39 = vpop.f32.mrf.mxu0 }
  0xae   :  { %v517_v27 = vpop.eup %516  ;;  %v97_v40 = vadd.f32 %v813_v20, %v96_v39 }
  0xaf   :  { %v167_v28 = vadd.f32 1.0, %v517_v27 }
  0xb1   :  { %518 = vrcp.f32 %v167_v28  ;;  %v179_v32 = vand.u32 2147483648, %v167_v28  ;;  %v177_v34 = vand.u32 2147483647, %v167_v28  ;;  %vm173_vm2 = vweird.f32 %v167_v28 }
  0xb3   :  { %v180_v36 = vor.u32 1.1754944e-38, %v179_v32  ;;  %vm178_vm4 = vcmp.eq.f32.partialorder %v177_v34, 8.507059e+37  ;;  %v42_v32 = vld [vmem:[%s854_s0 + $0x28] sm:$0xff] }
  0xb4   :  { %500 = vmatmul.msk.f32.gmra.mxu0 %vm51_vm0, %v42_v32 }
  0xb5   :  { %v99_v58 = vpop.f32.mrf.mxu0 }
  0xb6   :  { %v100_v59 = vadd.f32 %v813_v20, %v99_v58 }
  0xb7   :  { %v519_v29 = vpop.eup %518 }
  0xb8   :  { %v169_v30 = vmul.f32 %v519_v29, %v167_v28  ;;  %vm174_vm1 = vweird.f32 %v519_v29 }
  0xb9   :  { %vm175_vm3 = vmor %vm173_vm2, %vm174_vm1 }
  0xba   :  { %v170_v31 = vsub.f32 1.0, %v169_v30 }
  0xbc   :  { %v171_v33 = vmul.f32 %v519_v29, %v170_v31 }
  0xbd   :  { %v102_v11 = vpop.f32.mrf.mxu0 }
  0xbe   :  { %v172_v35 = vadd.f32 %v519_v29, %v171_v33  ;;  %v103_v12 = vadd.f32 %v813_v20, %v102_v11 }
  0xc0   :  { %v176_v37 = vsel %vm175_vm3, %v519_v29, %v172_v35 }
  0xc1   :  { %v181_v38 = vsel %vm178_vm4, %v180_v36, %v176_v37 }
  0xc2   :  { %201 = vmatmul.f32.vlgmr.msra.gmra.mxu2 %v181_v38 }
  0xd9   :  { %v105_v30 = vpop.f32.mrf.mxu0 }
  0xda   :  { %v106_v31 = vadd.f32 %v813_v20, %v105_v30 }
 0x145   :  { %v202_v42 = vpop.f32.mrf.mxu2 }
 0x146   :  { %v205_v43 = vadd.f32 %v202_v42, %v97_v40 }
 0x148   :  { %v504_v44 = vmul.f32 -1.442695, %v205_v43 }
 0x14a   :  { %520 = vpow2.f32 %v504_v44 }
 0x150   :  { %v521_v45 = vpop.eup %520 }
 0x151   :  { %v209_v46 = vadd.f32 1.0, %v521_v45 }
 0x153   :  { %522 = vrcp.f32 %v209_v46  ;;  %v221_v50 = vand.u32 2147483648, %v209_v46  ;;  %v219_v52 = vand.u32 2147483647, %v209_v46  ;;  %vm215_vm6 = vweird.f32 %v209_v46 }
 0x155   :  { %v222_v54 = vor.u32 1.1754944e-38, %v221_v50  ;;  %vm220_vm8 = vcmp.eq.f32.partialorder %v219_v52, 8.507059e+37  ;;  %v108_v50 = vpop.f32.mrf.mxu0 }
 0x159   :  { %v523_v47 = vpop.eup %522 }
 0x15a   :  { %v211_v48 = vmul.f32 %v523_v47, %v209_v46  ;;  %vm216_vm5 = vweird.f32 %v523_v47 }
 0x15b   :  { %vm217_vm7 = vmor %vm215_vm6, %vm216_vm5 }
 0x15c   :  { %v212_v49 = vsub.f32 1.0, %v211_v48  ;;  %v43_v48 = vld [vmem:[%s854_s0 + $0x30] sm:$0xff] }
 0x15d   :  { %501 = vmatmul.msk.f32.gmra.mxu0 %vm51_vm0, %v43_v48 }
 0x15e   :  { %v213_v51 = vmul.f32 %v523_v47, %v212_v49  ;;  %v44_v49 = vld [vmem:[%s854_s0 + $0x38] sm:$0xff]  ;;  %s603_s0 = smov [#allocation6]  }
 0x15f   :  { %s483_s20 = sshll.u32 %s603_s0, 4  ;;  %s484_s20 = int_to_ptr.vmem [resolvable:$true] %s483_s20 }
 0x160   :  { %v214_v53 = vadd.f32 %v523_v47, %v213_v51  ;;  %v109_v51 = vadd.f32 %v813_v20, %v108_v50 }
 0x162   :  { %v218_v55 = vsel %vm217_vm7, %v523_v47, %v214_v53 }
 0x163   :  { %v223_v56 = vsel %vm220_vm8, %v222_v54, %v218_v55 }
 0x164   :  { %243 = vmatmul.f32.vlgmr.msra.gmra.mxu3 %v223_v56 }
 0x165   :  { %502 = vmatmul.msk.f32.gmra.mxu0 %vm51_vm0, %v44_v49 }
 0x1e7   :  { %v244_v60 = vpop.f32.mrf.mxu3 }
 0x1e8   :  { %v247_v61 = vadd.f32 %v244_v60, %v100_v59 }
 0x1ea   :  { %v505_v62 = vmul.f32 -1.442695, %v247_v61 }
 0x1ec   :  { %524 = vpow2.f32 %v505_v62 }
 0x1f2   :  { %v525_v63 = vpop.eup %524 }
 0x1f3   :  { %v251_v0 = vadd.f32 1.0, %v525_v63 }
 0x1f5   :  { %526 = vrcp.f32 %v251_v0  ;;  %v263_v4 = vand.u32 2147483648, %v251_v0  ;;  %v261_v6 = vand.u32 2147483647, %v251_v0  ;;  %vm257_vm10 = vweird.f32 %v251_v0 }
 0x1f7   :  { %v264_v8 = vor.u32 1.1754944e-38, %v263_v4  ;;  %vm262_vm12 = vcmp.eq.f32.partialorder %v261_v6, 8.507059e+37 }
 0x1fb   :  { %v527_v1 = vpop.eup %526 }
 0x1fc   :  { %v253_v2 = vmul.f32 %v527_v1, %v251_v0  ;;  %vm258_vm9 = vweird.f32 %v527_v1 }
 0x1fd   :  { %vm259_vm11 = vmor %vm257_vm10, %vm258_vm9 }
 0x1fe   :  { %v254_v3 = vsub.f32 1.0, %v253_v2 }
 0x200   :  { %v255_v5 = vmul.f32 %v527_v1, %v254_v3  ;;  %v111_v3 = vpop.f32.mrf.mxu0 }
 0x202   :  { %v256_v7 = vadd.f32 %v527_v1, %v255_v5  ;;  %v112_v5 = vadd.f32 %v813_v20, %v111_v3 }
 0x204   :  { %v260_v9 = vsel %vm259_vm11, %v527_v1, %v256_v7 }
 0x205   :  { %v265_v10 = vsel %vm262_vm12, %v264_v8, %v260_v9 }
 0x206   :  { %285 = vmatmul.f32.vlgmr.msrb.gmra.mxu1 %v265_v10 }
 0x208   :  { %v114_v4 = vpop.f32.mrf.mxu0 }
 0x283   :  { %v286_v14 = vpop.f32.mrf.mxu1 }
 0x284   :  { %v289_v15 = vadd.f32 %v286_v14, %v103_v12 }
 0x286   :  { %v506_v16 = vmul.f32 -1.442695, %v289_v15 }
 0x288   :  { %528 = vpow2.f32 %v506_v16 }
 0x28e   :  { %v529_v17 = vpop.eup %528 }
 0x28f   :  { %v293_v18 = vadd.f32 1.0, %v529_v17 }
 0x291   :  { %530 = vrcp.f32 %v293_v18  ;;  %v305_v23 = vand.u32 2147483648, %v293_v18  ;;  %v303_v25 = vand.u32 2147483647, %v293_v18  ;;  %vm299_vm14 = vweird.f32 %v293_v18 }
 0x293   :  { %v306_v27 = vor.u32 1.1754944e-38, %v305_v23  ;;  %vm304_vm1 = vcmp.eq.f32.partialorder %v303_v25, 8.507059e+37 }
 0x297   :  { %v531_v19 = vpop.eup %530 }
 0x298   :  { %v295_v21 = vmul.f32 %v531_v19, %v293_v18  ;;  %vm300_vm13 = vweird.f32 %v531_v19 }
 0x299   :  { %vm301_vm15 = vmor %vm299_vm14, %vm300_vm13 }
 0x29a   :  { %v296_v22 = vsub.f32 1.0, %v295_v21 }
 0x29c   :  { %v297_v24 = vmul.f32 %v531_v19, %v296_v22  ;;  %v115_v22 = vadd.f32 %v813_v20, %v114_v4 }
 0x29e   :  { %v298_v26 = vadd.f32 %v531_v19, %v297_v24 }
 0x2a0   :  { %v302_v28 = vsel %vm301_vm15, %v531_v19, %v298_v26 }
 0x2a1   :  { %v307_v29 = vsel %vm304_vm1, %v306_v27, %v302_v28 }
 0x2a2   :  { %327 = vmatmul.f32.vlgmr.msrb.gmra.mxu2 %v307_v29 }
 0x325   :  { %v328_v33 = vpop.f32.mrf.mxu2 }
 0x326   :  { %v331_v34 = vadd.f32 %v328_v33, %v106_v31 }
 0x328   :  { %v507_v35 = vmul.f32 -1.442695, %v331_v34 }
 0x32a   :  { %532 = vpow2.f32 %v507_v35 }
 0x330   :  { %v533_v36 = vpop.eup %532 }
 0x331   :  { %v335_v37 = vadd.f32 1.0, %v533_v36 }
 0x333   :  { %534 = vrcp.f32 %v335_v37  ;;  %v347_v41 = vand.u32 2147483648, %v335_v37  ;;  %v345_v43 = vand.u32 2147483647, %v335_v37  ;;  %vm341_vm3 = vweird.f32 %v335_v37 }
 0x335   :  { %v348_v45 = vor.u32 1.1754944e-38, %v347_v41  ;;  %vm346_vm5 = vcmp.eq.f32.partialorder %v345_v43, 8.507059e+37 }
 0x339   :  { %v535_v38 = vpop.eup %534 }
 0x33a   :  { %v337_v39 = vmul.f32 %v535_v38, %v335_v37  ;;  %vm342_vm2 = vweird.f32 %v535_v38 }
 0x33b   :  { %vm343_vm4 = vmor %vm341_vm3, %vm342_vm2 }
 0x33c   :  { %v338_v40 = vsub.f32 1.0, %v337_v39 }
 0x33e   :  { %v339_v42 = vmul.f32 %v535_v38, %v338_v40 }
 0x340   :  { %v340_v44 = vadd.f32 %v535_v38, %v339_v42 }
 0x342   :  { %v344_v46 = vsel %vm343_vm4, %v535_v38, %v340_v44 }
 0x343   :  { %v349_v47 = vsel %vm346_vm5, %v348_v45, %v344_v46 }
 0x344   :  { %369 = vmatmul.f32.vlgmr.msrb.gmra.mxu3 %v349_v47 }
 0x3c7   :  { %v370_v52 = vpop.f32.mrf.mxu3 }
 0x3c8   :  { %v373_v53 = vadd.f32 %v370_v52, %v109_v51 }
 0x3ca   :  { %v508_v54 = vmul.f32 -1.442695, %v373_v53 }
 0x3cc   :  { %536 = vpow2.f32 %v508_v54 }
 0x3d2   :  { %v537_v55 = vpop.eup %536 }
 0x3d3   :  { %v377_v56 = vadd.f32 1.0, %v537_v55 }
 0x3d5   :  { %538 = vrcp.f32 %v377_v56  ;;  %v389_v60 = vand.u32 2147483648, %v377_v56  ;;  %v387_v62 = vand.u32 2147483647, %v377_v56  ;;  %vm383_vm7 = vweird.f32 %v377_v56 }
 0x3d7   :  { %v390_v0 = vor.u32 1.1754944e-38, %v389_v60  ;;  %vm388_vm8 = vcmp.eq.f32.partialorder %v387_v62, 8.507059e+37 }
 0x3db   :  { %v539_v57 = vpop.eup %538 }
 0x3dc   :  { %v379_v58 = vmul.f32 %v539_v57, %v377_v56  ;;  %vm384_vm6 = vweird.f32 %v539_v57 }
 0x3dd   :  { %vm385_vm0 = vmor %vm383_vm7, %vm384_vm6 }
 0x3de   :  { %v380_v59 = vsub.f32 1.0, %v379_v58 }
 0x3e0   :  { %v381_v61 = vmul.f32 %v539_v57, %v380_v59 }
 0x3e2   :  { %v382_v63 = vadd.f32 %v539_v57, %v381_v61 }
 0x3e4   :  { %v386_v1 = vsel %vm385_vm0, %v539_v57, %v382_v63 }
 0x3e5   :  { %v391_v2 = vsel %vm388_vm8, %v390_v0, %v386_v1 }
 0x3e6   :  { %411 = vmatmul.f32.vlgmr.msrb.gmra.mxu0 %v391_v2 }
 0x463   :  { %v412_v6 = vpop.f32.mrf.mxu0 }
 0x464   :  { %v415_v7 = vadd.f32 %v412_v6, %v112_v5 }
 0x466   :  { %v509_v8 = vmul.f32 -1.442695, %v415_v7 }
 0x468   :  { %540 = vpow2.f32 %v509_v8 }
 0x46e   :  { %v541_v9 = vpop.eup %540 }
 0x46f   :  { %v419_v10 = vadd.f32 1.0, %v541_v9 }
 0x471   :  { %542 = vrcp.f32 %v419_v10  ;;  %v431_v14 = vand.u32 2147483648, %v419_v10  ;;  %v429_v16 = vand.u32 2147483647, %v419_v10  ;;  %vm425_vm10 = vweird.f32 %v419_v10 }
 0x473   :  { %v432_v18 = vor.u32 1.1754944e-38, %v431_v14  ;;  %vm430_vm12 = vcmp.eq.f32.partialorder %v429_v16, 8.507059e+37 }
 0x477   :  { %v543_v11 = vpop.eup %542 }
 0x478   :  { %v421_v12 = vmul.f32 %v543_v11, %v419_v10  ;;  %vm426_vm9 = vweird.f32 %v543_v11 }
 0x479   :  { %vm427_vm11 = vmor %vm425_vm10, %vm426_vm9 }
 0x47a   :  { %v422_v13 = vsub.f32 1.0, %v421_v12 }
 0x47c   :  { %v423_v15 = vmul.f32 %v543_v11, %v422_v13 }
 0x47e   :  { %v424_v17 = vadd.f32 %v543_v11, %v423_v15 }
 0x480   :  { %v428_v19 = vsel %vm427_vm11, %v543_v11, %v424_v17 }
 0x481   :  { %v433_v21 = vsel %vm430_vm12, %v432_v18, %v428_v19 }
 0x482   :  { %453 = vmatmul.f32.vlgmr.msra.gmra.mxu1 %v433_v21 }
 0x4ff   :  { %v454_v23 = vpop.f32.mrf.mxu1 }
 0x500   :  { %v457_v24 = vadd.f32 %v454_v23, %v115_v22 }
 0x502   :  { %v510_v25 = vmul.f32 -1.442695, %v457_v24 }
 0x504   :  { %544 = vpow2.f32 %v510_v25 }
 0x50a   :  { %v545_v26 = vpop.eup %544 }
 0x50b   :  { %v461_v27 = vadd.f32 1.0, %v545_v26 }
 0x50d   :  { %546 = vrcp.f32 %v461_v27  ;;  %v473_v31 = vand.u32 2147483648, %v461_v27  ;;  %v471_v33 = vand.u32 2147483647, %v461_v27  ;;  %vm467_vm14 = vweird.f32 %v461_v27 }
 0x50f   :  { %v474_v34 = vor.u32 1.1754944e-38, %v473_v31  ;;  %vm472_vm1 = vcmp.eq.f32.partialorder %v471_v33, 8.507059e+37 }
 0x513   :  { %v547_v28 = vpop.eup %546 }
 0x514   :  { %v463_v29 = vmul.f32 %v547_v28, %v461_v27  ;;  %vm468_vm13 = vweird.f32 %v547_v28 }
 0x515   :  { %vm469_vm15 = vmor %vm467_vm14, %vm468_vm13 }
 0x516   :  { %v464_v30 = vsub.f32 1.0, %v463_v29 }
 0x518   :  { %v465_v32 = vmul.f32 %v547_v28, %v464_v30 }
 0x51a   :  { %v466_v20 = vadd.f32 %v547_v28, %v465_v32 }
 0x51c   :  { %v470_v35 = vsel %vm469_vm15, %v547_v28, %v466_v20 }
 0x51d   :  { %v475_v36 = vsel %vm472_vm1, %v474_v34, %v470_v35 }
 0x51e   :  { %477 = vst [vmem:[#allocation6] sm:$0xff] %v475_v36 }
 0x51f   :  { %488 = dma.vmem_to_hbm [thread:$0]  %s484_s20, 128, %s486_s23, [#allocation5]  }
 0x520   :  { %598 = dma.done.wait [#allocation5], 128  }
 0x521   :  { %599 = vsyncadd [#allocation5], 4294967168 }
 0x522   :  { %493 = vsyncpa [#allocation4], 1 }
 0x523   :  { %494 = vsyncpa [#allocation5], 1 }

</bundles_post_ra>
